<compile_context>
chip_gen: v7x
topology: tpu7x:2x2x1
jax: 0.10.0
libtpu: 0.0.40
codegen_flags: <defaults>
</compile_context>

<pallas_src>
import functools

import jax
import jax.numpy as jnp
from jax import lax
from jax.experimental import pallas as pl
from jax.experimental.pallas import tpu as pltpu


_BLOCK_BYTES_CAP = 2 << 20  # ~2 MiB logits block: bandwidth-saturating, VMEM-safe


def _vmem_capacity_bytes():
    """Best-effort query of per-core VMEM; conservative (v7x) fallback."""
    try:
        info = pltpu.get_tpu_info()
        cap = getattr(info, "vmem_capacity_bytes", None)
        if cap:
            return int(cap)
    except Exception:
        pass
    return 64 << 20  # v7x per-TensorCore VMEM (smallest of v5e/v6e/v7x)


def _lsce_kernel(logits_ref, tgt_ref, out_ref, *, eps, total_rows, row_tile,
                 num_classes):
    i = pl.program_id(0)

    x = logits_ref[...].astype(jnp.float32)          # [tm, K]
    tgt = tgt_ref[...]                               # [tm, 1] int32

    # Row max and shifted logits (shared by the exp path and the weighted sum).
    m = jnp.max(x, axis=1, keepdims=True)            # [tm, 1]
    xs = x - m                                       # [tm, K], <= 0 on real rows

    # log-sum-exp (stable: exp(xs) <= 1 even on garbage rows of a ragged tile).
    sum_exp = jnp.sum(jnp.exp(xs), axis=1, keepdims=True)       # [tm, 1]

    # Fused target-gather + mean as a single weighted lane reduction:
    #   (1-eps)*x[t] + eps*mean(x)  ==  sum_j x_j * (eps/K + (1-eps)*1{j==t})
    # Using xs instead of x is exact (sum(w) == 1 -> the m terms cancel) and
    # keeps both terms O(logit spread) instead of O(max|x|).
    col = lax.broadcasted_iota(jnp.int32, x.shape, 1)            # [tm, K]
    base = eps / num_classes
    w = jnp.where(col == tgt, (1.0 - eps) + base, base)          # [tm, K]
    wxs = jnp.sum(xs * w, axis=1, keepdims=True)                 # [tm, 1]

    per_row = jnp.log(sum_exp) - wxs                             # [tm, 1]

    # Mask rows past the true M (the ragged last tile of a cdiv grid reads
    # uninitialized VMEM; select does not propagate NaN/Inf, so garbage rows
    # contribute exactly 0 to the partial sum).
    row = lax.broadcasted_iota(jnp.int32, per_row.shape, 0) + i * row_tile
    per_row = jnp.where(row < total_rows, per_row, 0.0)

    # Per-tile partial sum -> a single (8,128) aligned output slab per tile.
    partial = jnp.sum(per_row)                                   # scalar f32
    r = lax.broadcasted_iota(jnp.int32, (8, 128), 0)
    c = lax.broadcasted_iota(jnp.int32, (8, 128), 1)
    out_ref[...] = jnp.where((r == 0) & (c == 0), partial, 0.0)


def lsce(logits, target, eps=0.05, row_tile=None):
    """logits: [M, K] float (f32/bf16), target: [M] int -> scalar f32 loss."""
    M, K = logits.shape
    assert target.shape == (M,)

    itemsize = jnp.dtype(logits.dtype).itemsize
    # Minimum sublane multiple for the logits dtype (f32: 8, bf16: 16, i8: 32).
    sub = {4: 8, 2: 16, 1: 32}.get(itemsize, 8)

    if row_tile is None:
        if M <= sub:
            row_tile = M                       # full-extent block, always legal
        else:
            # Rows allowed by the ~2 MiB block cap (sublane aligned).
            rows_cap = max(sub, ((_BLOCK_BYTES_CAP // (K * itemsize)) // sub) * sub)
            # >= 2 tiles so the "parallel" axis spans both v7x TensorCores;
            # near-equal tiles so the masked tail doesn't waste VPU work.
            tiles = max(2, pl.cdiv(M, rows_cap))
            row_tile = sub * pl.cdiv(pl.cdiv(M, tiles), sub)
            row_tile = max(sub, min(row_tile, rows_cap))

    num_tiles = pl.cdiv(M, row_tile)
    tgt2d = target.astype(jnp.int32).reshape(M, 1)

    kernel = functools.partial(
        _lsce_kernel, eps=float(eps), total_rows=M,
        row_tile=row_tile, num_classes=K)

    # VMEM accounting: double-buffered logits stream + f32/i32 tile temporaries
    # (upcast copy, iota, weights, exp, ...) + lane-padded target blocks +
    # output slabs + Mosaic internal-scratch headroom. Clamp to physical VMEM.
    vmem_cap = _vmem_capacity_bytes()
    block_in = row_tile * K * itemsize
    f32_tile = row_tile * K * 4
    needed = (2 * block_in
              + 6 * f32_tile
              + 2 * 2 * row_tile * 128 * 4
              + 2 * 8 * 128 * 4
              + (8 << 20))
    vmem_limit = int(min(vmem_cap, max(32 << 20, needed)))

    cost = pl.CostEstimate(
        flops=6 * M * K,
        transcendentals=M * K + M,
        bytes_accessed=M * K * itemsize + M * 4 + num_tiles * 8 * 128 * 4,
    )

    partials = pl.pallas_call(
        kernel,
        out_shape=jax.ShapeDtypeStruct((8 * num_tiles, 128), jnp.float32),
        grid_spec=pltpu.PrefetchScalarGridSpec(
            num_scalar_prefetch=0,
            grid=(num_tiles,),
            in_specs=[
                pl.BlockSpec((row_tile, K), lambda i: (i, 0)),
                pl.BlockSpec((row_tile, 1), lambda i: (i, 0)),
            ],
            out_specs=pl.BlockSpec((8, 128), lambda i: (i, 0)),
        ),
        compiler_params=pltpu.CompilerParams(
            dimension_semantics=("parallel",),   # row tiles are independent
            vmem_limit_bytes=vmem_limit,
        ),
        cost_estimate=cost,
    )(logits, tgt2d)

    # Tiny final reduction in plain JAX (each tile slab holds one partial sum
    # at [0, 0]; all other entries are exactly 0).
    return jnp.sum(partials) / jnp.float32(M)


def _lsce_reference(logits, target, eps=0.05):
    logp = jax.nn.log_softmax(logits.astype(jnp.float32), axis=1)
    nll = -logp[jnp.arange(target.shape[0]), target]
    smooth = -jnp.mean(logp, axis=1)
    return jnp.mean((1.0 - eps) * nll + eps * smooth)


def _check(logits, target, eps=0.05):
    loss = jax.block_until_ready(lsce(logits, target, eps=eps))
    ref = _lsce_reference(logits, target, eps=eps)
    assert jnp.allclose(loss, ref, atol=1e-4, rtol=1e-4), (loss, ref)


if __name__ == "__main__":
    key = jax.random.PRNGKey(0)

    # 1) Jigsaw-style shape: B batches of N-way permutation logits -> [B*N, N].
    B, N = 2, 8
    M = B * N
    k1, k2, key = jax.random.split(key, 3)
    logits = jax.random.normal(k1, (M, N), dtype=jnp.float32)
    target = jax.random.randint(k2, (M,), 0, N, dtype=jnp.int32)
    _check(logits, target, eps=0.05)

    # 2) Non-divisible M exercises the cdiv grid, masked last tile, balanced
    #    tiling, and the multi-tile parallel path.
    M2, K2 = 1003, 384
    k1, k2, key = jax.random.split(key, 3)
    logits2 = jax.random.normal(k1, (M2, K2), dtype=jnp.float32)
    target2 = jax.random.randint(k2, (M2,), 0, K2, dtype=jnp.int32)
    _check(logits2, target2, eps=0.05)

    # 3) bf16 logits at the boundary (halves HBM traffic; compute stays f32).
    M3, K3 = 64, 256
    k1, k2, key = jax.random.split(key, 3)
    logits3 = jax.random.normal(k1, (M3, K3), dtype=jnp.bfloat16)
    target3 = jax.random.randint(k2, (M3,), 0, K3, dtype=jnp.int32)
    _check(logits3, target3, eps=0.05)

    # 4) Logits with a large common offset: exercises the numerically stable
    #    per_row = log(sum exp(x-m)) - sum((x-m)*w) formulation.
    M4, K4 = 128, 512
    k1, k2, key = jax.random.split(key, 3)
    logits4 = jax.random.normal(k1, (M4, K4), dtype=jnp.float32) + 300.0
    target4 = jax.random.randint(k2, (M4,), 0, K4, dtype=jnp.int32)
    _check(logits4, target4, eps=0.05)

    print("KERNEL_OK")
</pallas_src>

<mosaic_0001>
module attributes {stable_mosaic.version = 11 : i64} {
  func.func @_lsce_kernel(%arg0: i32, %arg1: memref<8x8xf32, #tpu.memory_space<vmem>>, %arg2: memref<8x1xi32, #tpu.memory_space<vmem>>, %arg3: memref<8x128xf32, #tpu.memory_space<vmem>>) attributes {dimension_semantics = [#tpu.dimension_semantics<parallel>], iteration_bounds = array<i64: 2>, scalar_prefetch = 0 : i64, scratch_operands = 0 : i64, tpu.core_type = #tpu.core_type<tc>, window_params = [{transform_indices = @transform_0, window_bounds = array<i64: 8, 8>}, {transform_indices = @transform_1, window_bounds = array<i64: 8, 1>}, {transform_indices = @transform_2, window_bounds = array<i64: 8, 128>}]} {
    %c0 = arith.constant 0 : index
    %c0_0 = arith.constant 0 : index
    %0 = vector.load %arg1[%c0, %c0_0] : memref<8x8xf32, #tpu.memory_space<vmem>>, vector<8x8xf32>
    %c0_1 = arith.constant 0 : index
    %c0_2 = arith.constant 0 : index
    %1 = vector.load %arg2[%c0_1, %c0_2] : memref<8x1xi32, #tpu.memory_space<vmem>>, vector<8x1xi32>
    %cst = arith.constant dense<0xFF800000> : vector<8xf32>
    %2 = vector.multi_reduction <maximumf>, %0, %cst [1] : vector<8x8xf32> to vector<8xf32>
    %3 = vector.shape_cast %2 : vector<8xf32> to vector<8x1xf32>
    %4 = vector.broadcast %3 : vector<8x1xf32> to vector<8x8xf32>
    %5 = arith.subf %0, %4 : vector<8x8xf32>
    %6 = math.exp %5 : vector<8x8xf32>
    %cst_3 = arith.constant dense<0.000000e+00> : vector<8xf32>
    %7 = vector.multi_reduction <add>, %6, %cst_3 [1] : vector<8x8xf32> to vector<8xf32>
    %8 = vector.shape_cast %7 : vector<8xf32> to vector<8x1xf32>
    %9 = tpu.iota {dimensions = array<i32: 1>} : vector<8x8xi32>
    %10 = vector.broadcast %1 : vector<8x1xi32> to vector<8x8xi32>
    %11 = arith.cmpi eq, %9, %10 : vector<8x8xi32>
    %cst_4 = arith.constant 9.562500e-01 : f32
    %cst_5 = arith.constant 6.250000e-03 : f32
    %12 = vector.broadcast %cst_4 : f32 to vector<8x8xf32>
    %13 = vector.broadcast %cst_5 : f32 to vector<8x8xf32>
    %14 = arith.select %11, %12, %13 : vector<8x8xi1>, vector<8x8xf32>
    %15 = arith.mulf %5, %14 : vector<8x8xf32>
    %cst_6 = arith.constant dense<0.000000e+00> : vector<8xf32>
    %16 = vector.multi_reduction <add>, %15, %cst_6 [1] : vector<8x8xf32> to vector<8xf32>
    %17 = vector.shape_cast %16 : vector<8xf32> to vector<8x1xf32>
    %18 = math.log %8 : vector<8x1xf32>
    %19 = arith.subf %18, %17 : vector<8x1xf32>
    %20 = tpu.iota {dimensions = array<i32: 0>} : vector<8x1xi32>
    %c8_i32 = arith.constant 8 : i32
    %21 = arith.muli %arg0, %c8_i32 : i32
    %22 = vector.broadcast %21 : i32 to vector<8x1xi32>
    %23 = arith.addi %20, %22 : vector<8x1xi32>
    %c16_i32 = arith.constant 16 : i32
    %24 = vector.broadcast %c16_i32 : i32 to vector<8x1xi32>
    %25 = arith.cmpi slt, %23, %24 : vector<8x1xi32>
    %cst_7 = arith.constant 0.000000e+00 : f32
    %26 = vector.broadcast %cst_7 : f32 to vector<8x1xf32>
    %27 = arith.select %25, %19, %26 : vector<8x1xi1>, vector<8x1xf32>
    %28 = vector.shape_cast %27 : vector<8x1xf32> to vector<1x8x1xf32>
    %cst_8 = arith.constant dense<0.000000e+00> : vector<1xf32>
    %29 = vector.multi_reduction <add>, %28, %cst_8 [1, 2] : vector<1x8x1xf32> to vector<1xf32>
    %30 = vector.shape_cast %29 : vector<1xf32> to vector<1x1x1xf32>
    %31 = vector.extract %30[0, 0, 0] : f32 from vector<1x1x1xf32>
    %32 = tpu.iota {dimensions = array<i32: 0>} : vector<8x128xi32>
    %33 = tpu.iota {dimensions = array<i32: 1>} : vector<8x128xi32>
    %c0_i32 = arith.constant 0 : i32
    %34 = vector.broadcast %c0_i32 : i32 to vector<8x128xi32>
    %35 = arith.cmpi eq, %32, %34 : vector<8x128xi32>
    %c0_i32_9 = arith.constant 0 : i32
    %36 = vector.broadcast %c0_i32_9 : i32 to vector<8x128xi32>
    %37 = arith.cmpi eq, %33, %36 : vector<8x128xi32>
    %38 = arith.andi %35, %37 : vector<8x128xi1>
    %cst_10 = arith.constant 0.000000e+00 : f32
    %39 = vector.broadcast %31 : f32 to vector<8x128xf32>
    %40 = vector.broadcast %cst_10 : f32 to vector<8x128xf32>
    %41 = arith.select %38, %39, %40 : vector<8x128xi1>, vector<8x128xf32>
    %c0_11 = arith.constant 0 : index
    %c0_12 = arith.constant 0 : index
    %42 = vector.load %arg3[%c0_11, %c0_12] : memref<8x128xf32, #tpu.memory_space<vmem>>, vector<8x128xf32>
    tpu.vector_store %arg3[%c0_11, %c0_12], %41 {strides = array<i32>} : memref<8x128xf32, #tpu.memory_space<vmem>>, vector<8x128xf32>,
    return
  }
  func.func @transform_0(%arg0: i32) -> (i32, i32) {
    %c0_i32 = arith.constant 0 : i32
    %c0_i32_0 = arith.constant 0 : i32
    return %arg0, %c0_i32 : i32, i32
  }
  func.func @transform_1(%arg0: i32) -> (i32, i32) {
    %c0_i32 = arith.constant 0 : i32
    %c0_i32_0 = arith.constant 0 : i32
    return %arg0, %c0_i32 : i32, i32
  }
  func.func @transform_2(%arg0: i32) -> (i32, i32) {
    %c0_i32 = arith.constant 0 : i32
    %c0_i32_0 = arith.constant 0 : i32
    return %arg0, %c0_i32 : i32, i32
  }
}

</mosaic_0001>

<bundles_post_ra>
// kernel: tpu_custom_call.1
= control target key start
LH: loop header
LB: loop body
LE: loop exit
PB: predicated region body
PF: predicated region fallthrough
CT: control target
= control target key end

     0   :  { %7 = vsyncpa [#allocation3], 0  ;;  %s540_s0 = inlined_call_operand.vmem [shape: f32[16,8], index: 0, kind: input, shape index: {}]   ;;  %s541_s1 = inlined_call_operand.vmem [shape: s32[16,1], index: 1, kind: input, shape index: {}]   ;;  %s542_s2 = inlined_call_operand.hbm [shape: f32[16,128], index: 2, kind: output, shape index: {}]  }
   0x1   :  { %9 = vsyncpa [#allocation3 + $0x1], 0  ;;  %s433_s9 = smov 0   ;;  %s435_s10 = smov 0  }
   0x2   :  { %s437_s11 = smov 0   ;;  %s439_s12 = smov 0  }
   0x3 LB: > { %s454_s13 = sadd.s32 4294967295, %s413_s12   ;;  %s291_s14 = sadd.s32 4294967294, %s413_s12   ;;  %s413_s12 = sphi %s439_s12, %s548_s12   ;;  %s409_s11 = sphi %s437_s11, %s547_s11   ;;  %s405_s10 = sphi %s435_s10, %s546_s10   ;;  %s401_s9 = sphi %s433_s9, %s545_s9  }
   0x4   : > { %s458_s15 = sadd.s32 1, %s413_s12   ;;  %s74_s16 = sadd.s32 1, %s409_s11 }
   0x5   : > { %s71_s17 = ssub.s32 %s413_s12, %s458_s15  ;;  %p84_p0 = scmp.ne.s32.totalorder %s409_s11, %s405_s10 }
   0x6   : > { %p72_p1 = scmp.eq.s32.totalorder %s71_s17, 0  ;;  %p85_p2 = scmp.eq.s32.totalorder %s454_s13, 1 }
   0x7   : > { %p90_p3 = scmp.ne.s32.totalorder %s405_s10, %s401_s9  ;;  %p91_p4 = scmp.eq.s32.totalorder %s291_s14, 1 }
   0x8   : > { %s469_s18 = scalar_select %p72_p1, %s409_s11, %s74_s16  }
   0x9   : > { %p471_p5 = por %p85_p2, %p84_p0  ;;  %p475_p6 = por %p91_p4, %p90_p3 }
   0xa   : > { %p294_p7 = scmp.ge.s32.totalorder %s413_s12, 1  ;;  %p123_p8 = scmp.lt.s32.totalorder %s413_s12, 3 }
   0xc   : > { %p124_p9 = pnand %p294_p7, %p123_p8 }
   0xd   : > { %p148_p10 = scmp.lt.s32.totalorder (!%p124_p9), %s454_s13, 1  ;;  %v415_v0 = vmov (!%p124_p9), 0   ;;  %vm158_vm0 = vcmask (!%p124_p9), 64512   ;;  %v168_v6 = vlaneseq (!%p124_p9)  ;;  %v416_v10 = vmov (!%p124_p9), 0.00625   ;;  %s298_s29 = sshll.u32 (!%p124_p9), %s454_s13, 3 }
   0xe   : > { %127 = sbr.rel (%p124_p9) target bundleno = 564 (0x234), region = 28  ;;  %346 = vset.pattern.permute.xlu0 (!%p124_p9), %v415_v0  ;;  %v185_v18 = vstv (!%p124_p9), %s298_s29  ;;  %vm189_vm3 = vcmask (!%p124_p9), 7168   ;;  %s145_s30 = sand.u32 (!%p124_p9), 1, %s405_s10  }
   0xf   : > { %v169_v8 = vand.u32 (!%p124_p9), 127, %v168_v6  ;;  %v183_v17 = vshrl.u32 (!%p124_p9), %v168_v6, 7  ;;  %s295_s3 = sshll.u32 (!%p124_p9), %s145_s30, 3  ;;  %s300_s4 = sshll.u32 (!%p124_p9), %s454_s13, 7 }
  0x10   : > { %s147_s5 = scalar_lea.vmem (!%p124_p9), [#allocation2], %s295_s3  ;;  %s498_s16 = scalar_lea.hbm (!%p124_p9), %s542_s2, %s300_s4 }
  0x11   : > { %v186_v19 = vadd.s32 (!%p124_p9), %v185_v18, %v183_v17  ;;  %vm200_vm4 = vcmp.eq.s32.totalorder (!%p124_p9), %v183_v17, 0  ;;  %vm201_vm5 = vcmp.eq.s32.totalorder (!%p124_p9), %v169_v8, 0  ;;  %s220_s6 = sshll.u32 (!%p124_p9), %s147_s5, 4  ;;  %s207_s17 = scalar_lea.sflag (!%p124_p9), [#allocation3], %s145_s30  ;;  %s500_s6 = int_to_ptr.vmem [resolvable:$true] %s220_s6 }
  0x12   : > { %vm202_vm6 = vmand (!%p124_p9), %vm200_vm4, %vm201_vm5 }
  0x13   : > { %vm187_vm2 = vcmp.lt.s32.totalorder (!%p124_p9), %v186_v19, 16 }
  0x15   : > { %s149_s21 = scalar_select %p148_p10, %s454_s13, 1 }
  0x16   : > { %s417_s13 = smov [#allocation2]  }
  0x17   : > { %s296_s22 = sshll.u32 %s149_s21, 3  ;;  %s351_s21 = scalar_lea.vmem %s500_s6, 128 }
  0x18   : > { %s151_s25 = scalar_lea.vmem %s540_s0, %s296_s22  ;;  %s155_s28 = scalar_lea.vmem %s541_s1, %s296_s22 }
  0x19   : > { %v156_v1 = vld [vmem:[%s151_s25] sm:$0xff]  ;;  %p352_p11 = scmp.ne.s32.totalorder %s500_s6, %s351_s21  ;;  %s355_s22 = sshll.u32 %s417_s13, 4  ;;  %s356_s22 = int_to_ptr.vmem [resolvable:$false] %s355_s22 }
  0x1a   : > { %v159_v2 = vsel %vm158_vm0, %v156_v1, -inf  ;;  %v157_v3 = vld [vmem:[%s155_s28] sm:$0xff]  ;;  %s357_s23 = scalar_lea.vmem %s356_s22, 256  ;;  %p358_p0 = scmp.lt.s32.totalorder %s500_s6, %s356_s22 }
  0x1b   : > { %160 = vmax.xlane.f32.xlu0 %v159_v2  ;;  %p353_p12 = pnand %p352_p11, %p471_p5  ;;  %p359_p1 = scmp.lt.s32.totalorder %s357_s23, %s351_s21 }
  0x1d   : > { %p354_p13 = pneg %p353_p12  ;;  %p360_p2 = por %p359_p1, %p358_p0 }
  0x1f   : > { %p361_p3 = pnand %p360_p2, %p354_p13 }
  0x31   : > { %171 = vperm.xlu0 %346, %v157_v3  }
  0xa8   : > { %v161_v4 = vpop.xlane.xlu0 %160 }
  0xa9   : > { %v162_v5 = vsub.f32 %v156_v1, %v161_v4 }
  0xab   : > { %v163_v7 = vmul.f32 1.442695, %v162_v5 }
  0xad   : > { %347 = vpow2.f32 %v163_v7 }
  0xb0   : > { %v172_v9 = vpop.permute.xlu0 %171 }
  0xb1   : > { %vm173_vm1 = vcmp.eq.s32.totalorder %v169_v8, %v172_v9 }
  0xb2   : > { %v174_v11 = vsel %vm173_vm1, 0.95625, %v416_v10 }
  0xb3   : > { %v175_v14 = vmul.f32 %v174_v11, %v162_v5 }
  0xb5   : > { %v176_v15 = vsel %vm158_vm0, %v175_v14, 0.0 }
  0xb7   : > { %v348_v12 = vpop.eup %347 }
  0xb8   : > { %v165_v13 = vsel %vm158_vm0, %v348_v12, 0.0 }
  0xb9   : > { %166 = vadd.xlane.f32.xlu1 %v165_v13 }
  0xbd   : > { %177 = vadd.xlane.f32.xlu1 %v176_v15 }
 0x146   : > { %v167_v16 = vpop.xlane.xlu1 %166 }
 0x147   : > { %349 = vlog2.f32 %v167_v16 }
 0x14a   : > { %v178_v22 = vpop.xlane.xlu1 %177 }
 0x151   : > { %v350_v20 = vpop.eup %349 }
 0x152   : > { %v180_v21 = vmul.f32 0.6931472, %v350_v20 }
 0x154   : > { %v181_v23 = vsub.f32 %v180_v21, %v178_v22 }
 0x156   : > { %v188_v24 = vsel %vm187_vm2, %v181_v23, 0.0 }
 0x157   : > { %v190_v25 = vsel %vm189_vm3, %v188_v24, 0.0 }
 0x158   : > { %191 = vadd.xlane.f32.xlu1 %v190_v25 }
 0x1e5   : > { %v192_v26 = vpop.xlane.xlu1 %191 }
 0x1e6   : > { %v193_v27 = vrot.slane %v192_v26, 4 }
 0x1e8   : > { %v194_v28 = vadd.f32 %v193_v27, %v192_v26 }
 0x1ea   : > { %v195_v29 = vrot.slane %v194_v28, 2 }
 0x1ec   : > { %v196_v30 = vadd.f32 %v195_v29, %v194_v28 }
 0x1ee   : > { %v197_v31 = vrot.slane %v196_v30, 1 }
 0x1f0   : > { %v198_v32 = vadd.f32 %v197_v31, %v196_v30 }
 0x1f2   : > { %303 = vpush %v198_v32 }
 0x223   : > { %s304_s7 = spop %303 }
 0x224   : > { %v203_v33 = vstv %s304_s7 }
 0x225   : > { %v204_v34 = vsel %vm202_vm6, %v203_v33, 0.0 }
 0x226   : > { %205 = vst [vmem:[%s147_s5] sm:$0xff] %v204_v34 }
 0x227   : > { %364 = shalt.err (!%p361_p3)
}
 0x228   : > { %s365_s24 = scalar_lea.hbm %s498_s16, 128  ;;  %s369_s27 = scalar_lea.hbm %s542_s2, 256 }
 0x229   : > { %p366_p4 = scmp.ne.s32.totalorder %s498_s16, %s365_s24  ;;  %p370_p9 = scmp.lt.u32.totalorder %s498_s16, %s542_s2 }
 0x22a   : > { %p371_p10 = scmp.lt.u32.totalorder %s369_s27, %s365_s24  ;;  %p373_p12 = scmp.lt.u32.totalorder %s365_s24, %s498_s16 }
 0x22b   : > { %p367_p7 = pnand %p366_p4, %p471_p5 }
 0x22c   : > { %p372_p11 = por %p371_p10, %p370_p9 }
 0x22d   : > { %p368_p8 = pneg %p367_p7 }
 0x22e   : > { %p374_p13 = por %p373_p12, %p372_p11 }
 0x230   : > { %p375_p0 = pnand %p374_p13, %p368_p8 }
 0x232   : > { %378 = shalt.err (!%p375_p0)
}
 0x233   : > { %305 = dma.vmem_to_hbm [thread:$0]  (%p471_p5), %s500_s6, 128, %s498_s16, %s207_s17  }
 0x234 PF: > { %p311_p1 = scmp.ge.s32.totalorder %s413_s12, 2  ;;  %s232_s30 = sand.u32 1, %s401_s9  }
 0x235   : > { %s233_s3 = scalar_lea.sflag [#allocation3], %s232_s30 }
 0x236   : > { %p308_p2 = pnand %p311_p1, %p475_p6 }
 0x238   : > { %396 = dma.done.wait (!%p308_p2), %s233_s3, 128  }
 0x239   : > { %398 = vsyncadd (!%p308_p2), %s233_s3, 4294967168  ;;  %p12_p3 = scmp.ge.s32.totalorder %s458_s15, 4   ;;  %s545_s9 = smov %s405_s10 }
 0x23a   : > { %s546_s10 = smov %s409_s11  ;;  %s547_s11 = smov %s469_s18 }
 0x23b   : > { %s548_s12 = smov %s458_s15  ;;  %14 = sbr.rel (!%p12_p3) target bundleno = 3 (0x3), region = 66 }
 0x242   :  { %238 = vsyncpa [#allocation3], 1 }
 0x243   :  { %240 = vsyncpa [#allocation3 + $0x1], 1 }

</bundles_post_ra>
